<compile_context>
chip_gen: v7x
topology: tpu7x:2x2x1
jax: 0.10.0
libtpu: 0.0.40
codegen_flags: <defaults>
</compile_context>

<pallas_src>
import jax
import jax.numpy as jnp
from jax.experimental import pallas as pl
from jax.experimental.pallas import tpu as pltpu

_LANE = 128
_COL_CHOICES = (1024, 512, 256, 128)   # lane-dense last dims (multiples of 128)


def _round_up(a, b):
    return pl.cdiv(a, b) * b


def _tile_config():
    """Return (rows-per-block at cols=1024, vmem_limit_bytes) for this chip."""
    try:
        kind = jax.devices()[0].device_kind.lower()
    except Exception:
        return 512, None
    if "v7" in kind:
        # 8 MiB blocks; 2 in + 2 out buffers = 32 MiB, under 64 MiB physical VMEM.
        return 2048, 48 << 20
    if "v6" in kind:
        # 8 MiB blocks; 32 MiB double-buffered, ample headroom in 128 MiB VMEM.
        return 2048, 64 << 20
    if "v5e" in kind or ("v5" in kind and "lite" in kind):
        # 4 MiB blocks; raise the 16 MiB default scoped limit.
        return 1024, 32 << 20
    # v4 / v5p / unknown: conservative but still well past the roofline knee.
    return 1024, 32 << 20


def _make_powerlaw_kernel(eps):
    def kernel(x_ref, o_ref):
        # Upcast to f32 (free: VPU/EUP slack in a mem-bound kernel).
        y = x_ref[...].astype(jnp.float32) + jnp.float32(eps)
        s = jnp.sqrt(jnp.abs(y))                                  # EUP
        o_ref[...] = jnp.where(y < 0.0, -s, s).astype(o_ref.dtype)  # VPU select == sign(y)*s
    return kernel


def _powerlaw_jnp(x, eps):
    y = x.astype(jnp.float32) + jnp.float32(eps)
    s = jnp.sqrt(jnp.abs(y))
    return jnp.where(y < 0.0, -s, s).astype(x.dtype)


def powerlaw(x: jax.Array, eps: float = 1e-6, *, inplace: bool = False) -> jax.Array:
    """PowerLaw.forward: sign(x+eps)*sqrt(|x+eps|), elementwise, same shape/dtype."""
    orig_shape = x.shape
    dtype = x.dtype
    total = int(x.size)
    if total == 0:
        return x

    rem = total % _LANE
    main = total - rem
    if main == 0:
        # Tiny tensor (< 128 elements): a kernel launch isn't worth it.
        return _powerlaw_jnp(x, eps)

    flat = x.reshape(-1)
    main_flat = flat if rem == 0 else flat[:main]

    # Largest lane-dense column count that divides the aligned prefix exactly
    # -> reshape is a free bitcast; no padding copy, no output slice copy.
    cols = next(c for c in _COL_CHOICES if main % c == 0)
    rows = main // cols

    base_rows, vmem_limit = _tile_config()
    block_rows_cap = base_rows * (1024 // cols)   # keep block ~constant in bytes

    if rows <= 8:
        tr = rows                                  # full-dim block (allowed)
    else:
        # >= ~4 blocks on large inputs: keeps both v7x TCs busy and gives the
        # pipeline >= 2 steps per core; capped by the per-chip VMEM budget.
        target = max(8, _round_up(pl.cdiv(rows, 4), 8))
        tr = min(block_rows_cap, target)
    grid = pl.cdiv(rows, tr)                       # ragged last block is masked

    out2d = pl.pallas_call(
        _make_powerlaw_kernel(eps),
        out_shape=jax.ShapeDtypeStruct((rows, cols), dtype),
        grid_spec=pltpu.PrefetchScalarGridSpec(
            num_scalar_prefetch=0,
            grid=(grid,),
            in_specs=[pl.BlockSpec((tr, cols), lambda i: (i, 0))],
            out_specs=pl.BlockSpec((tr, cols), lambda i: (i, 0)),
        ),
        compiler_params=pltpu.CompilerParams(
            dimension_semantics=("parallel",),
            vmem_limit_bytes=vmem_limit,
        ),
        cost_estimate=pl.CostEstimate(
            flops=2 * main,
            transcendentals=main,
            bytes_accessed=2 * main * dtype.itemsize,
        ),
        input_output_aliases=({0: 0} if inplace else {}),
    )(main_flat.reshape(rows, cols))

    if rem == 0:
        return out2d.reshape(orig_shape)

    # Sub-128-element tail: plain jnp (negligible), then stitch back together.
    tail_out = _powerlaw_jnp(flat[main:], eps)
    return jnp.concatenate([out2d.reshape(-1), tail_out]).reshape(orig_shape)


def _powerlaw_ref(x, eps=1e-6):
    y = x + eps
    return jnp.sign(y) * jnp.sqrt(jnp.abs(y))


if __name__ == "__main__":
    key = jax.random.PRNGKey(0)
    # Typical PowerLaw input in cnnimageretrieval: NCHW feature map (small test size).
    x = jax.random.normal(key, (2, 4, 16, 16), dtype=jnp.float32)
    out = jax.block_until_ready(powerlaw(x, eps=1e-6))
    ref = _powerlaw_ref(x, eps=1e-6)
    assert out.shape == x.shape and out.dtype == x.dtype
    assert jnp.allclose(out, ref, atol=1e-6, rtol=1e-6), "mismatch vs reference (aligned)"

    # Non-128-divisible size exercises the pad-free path (kernel prefix + jnp tail).
    x2 = jax.random.normal(jax.random.PRNGKey(1), (3, 5, 7, 11), dtype=jnp.float32)
    out2 = jax.block_until_ready(powerlaw(x2, eps=1e-6))
    ref2 = _powerlaw_ref(x2, eps=1e-6)
    assert out2.shape == x2.shape and out2.dtype == x2.dtype
    assert jnp.allclose(out2, ref2, atol=1e-6, rtol=1e-6), "mismatch vs reference (ragged)"

    print("KERNEL_OK")
</pallas_src>

<mosaic_0001>
module attributes {stable_mosaic.version = 11 : i64} {
  func.func @kernel(%arg0: i32, %arg1: memref<2x1024xf32, #tpu.memory_space<vmem>>, %arg2: memref<2x1024xf32, #tpu.memory_space<vmem>>) attributes {dimension_semantics = [#tpu.dimension_semantics<parallel>], iteration_bounds = array<i64: 1>, scalar_prefetch = 0 : i64, scratch_operands = 0 : i64, tpu.core_type = #tpu.core_type<tc>, window_params = [{transform_indices = @transform_0, window_bounds = array<i64: 2, 1024>}, {transform_indices = @transform_1, window_bounds = array<i64: 2, 1024>}]} {
    %c0 = arith.constant 0 : index
    %c0_0 = arith.constant 0 : index
    %0 = vector.load %arg1[%c0, %c0_0] : memref<2x1024xf32, #tpu.memory_space<vmem>>, vector<2x1024xf32>
    %cst = arith.constant 9.99999997E-7 : f32
    %1 = vector.broadcast %cst : f32 to vector<2x1024xf32>
    %2 = arith.addf %0, %1 : vector<2x1024xf32>
    %3 = math.absf %2 : vector<2x1024xf32>
    %4 = math.sqrt %3 : vector<2x1024xf32>
    %cst_1 = arith.constant 0.000000e+00 : f32
    %5 = vector.broadcast %cst_1 : f32 to vector<2x1024xf32>
    %6 = arith.cmpf olt, %2, %5 : vector<2x1024xf32>
    %cst_2 = arith.constant 0.000000e+00 : f32
    %7 = vector.broadcast %cst_2 : f32 to vector<2x1024xf32>
    %8 = arith.subf %7, %4 : vector<2x1024xf32>
    %9 = arith.select %6, %8, %4 : vector<2x1024xi1>, vector<2x1024xf32>
    %c0_3 = arith.constant 0 : index
    %c0_4 = arith.constant 0 : index
    %10 = vector.load %arg2[%c0_3, %c0_4] : memref<2x1024xf32, #tpu.memory_space<vmem>>, vector<2x1024xf32>
    tpu.vector_store %arg2[%c0_3, %c0_4], %9 {strides = array<i32>} : memref<2x1024xf32, #tpu.memory_space<vmem>>, vector<2x1024xf32>,
    return
  }
  func.func @transform_0(%arg0: i32) -> (i32, i32) {
    %c0_i32 = arith.constant 0 : i32
    %c0_i32_0 = arith.constant 0 : i32
    return %arg0, %c0_i32 : i32, i32
  }
  func.func @transform_1(%arg0: i32) -> (i32, i32) {
    %c0_i32 = arith.constant 0 : i32
    %c0_i32_0 = arith.constant 0 : i32
    return %arg0, %c0_i32 : i32, i32
  }
}

</mosaic_0001>

<bundles_post_ra>
// kernel: tpu_custom_call.1
= control target key start
LH: loop header
LB: loop body
LE: loop exit
PB: predicated region body
PF: predicated region fallthrough
CT: control target
= control target key end

     0   :  { %6 = vsyncpa [#allocation3], 0  ;;  %s154_s0 = inlined_call_operand.hbm [shape: f32[2,1024], index: 0, kind: input, shape index: {}]   ;;  %s155_s1 = inlined_call_operand.hbm [shape: f32[2,1024], index: 1, kind: output, shape index: {}]  }
   0x1   :  { %7 = vsyncpa [#allocation4], 0  ;;  %s118_s6 = smov [#allocation2]   ;;  %s70_s10 = scalar_lea.hbm %s154_s0, 256 }
   0x2   :  { %s14_s7 = sshll.u32 %s118_s6, 4  ;;  %p71_p0 = scmp.ne.s32.totalorder %s154_s0, %s70_s10  ;;  %s15_s7 = int_to_ptr.vmem [resolvable:$true] %s14_s7 }
   0x3   :  { %p74_p1 = scmp.lt.u32.totalorder %s70_s10, %s154_s0 }
   0x5   :  { %p76_p2 = pnand %p74_p1, %p71_p0 }
   0x7   :  { %79 = shalt.err (!%p76_p2)
}
   0x8   :  { %s80_s15 = scalar_lea.vmem %s15_s7, 256  ;;  %p85_p4 = scmp.lt.s32.totalorder %s15_s7, %s15_s7 }
   0x9   :  { %p81_p3 = scmp.ne.s32.totalorder %s15_s7, %s80_s15  ;;  %p86_p5 = scmp.lt.s32.totalorder %s80_s15, %s80_s15 }
   0xb   :  { %p87_p6 = por %p86_p5, %p85_p4 }
   0xd   :  { %p88_p7 = pnand %p87_p6, %p81_p3 }
   0xf   :  { %91 = shalt.err (!%p88_p7)
}
  0x10   :  { %17 = dma.hbm_to_vmem [thread:$0]  %s154_s0, 256, %s15_s7, [#allocation3]  }
  0x11   :  { %114 = dma.done.wait [#allocation3], 256  }
  0x12   :  { %115 = vsyncadd [#allocation3], 4294967040  ;;  %v21_v0 = vld [vmem:[#allocation2] sm:$0xff]  ;;  %v22_v1 = vld [vmem:[#allocation2 + $0x8] sm:$0xff]  ;;  %s119_s0 = smov [#allocation5]  }
  0x13   :  { %v23_v2 = vadd.f32 1e-06, %v21_v0  ;;  %v24_v3 = vadd.f32 1e-06, %v22_v1  ;;  %s55_s18 = sshll.u32 %s119_s0, 4  ;;  %s56_s18 = int_to_ptr.vmem [resolvable:$true] %s55_s18 }
  0x14   :  { %s92_s19 = scalar_lea.vmem %s56_s18, 256  ;;  %p97_p9 = scmp.lt.s32.totalorder %s56_s18, %s56_s18 }
  0x15   :  { %v25_v4 = vand.u32 2147483647, %v23_v2  ;;  %v26_v5 = vand.u32 2147483647, %v24_v3  ;;  %vm41_vm4 = vcmp.lt.f32.partialorder %v23_v2, 0.0  ;;  %vm42_vm5 = vcmp.lt.f32.partialorder %v24_v3, 0.0  ;;  %p93_p8 = scmp.ne.s32.totalorder %s56_s18, %s92_s19  ;;  %p98_p10 = scmp.lt.s32.totalorder %s92_s19, %s92_s19 }
  0x17   :  { %66 = vrsqrt.f32 %v25_v4  ;;  %vm29_vm0 = vcmp.eq.f32.partialorder %v25_v4, inf  ;;  %v32_v7 = vand.u32 2147483648, %v25_v4  ;;  %vm31_vm1 = vcmp.eq.f32.partialorder %v25_v4, 0.0  ;;  %p99_p11 = por %p98_p10, %p97_p9 }
  0x18   :  { %68 = vrsqrt.f32 %v26_v5  ;;  %vm36_vm2 = vcmp.eq.f32.partialorder %v26_v5, inf  ;;  %v39_v10 = vand.u32 2147483648, %v26_v5  ;;  %vm38_vm3 = vcmp.eq.f32.partialorder %v26_v5, 0.0 }
  0x19   :  { %p100_p12 = pnand %p99_p11, %p93_p8 }
  0x21   :  { %v67_v6 = vpop.eup %66 }
  0x22   :  { %v69_v8 = vpop.eup %68  ;;  %v28_v9 = vmul.f32 %v67_v6, %v25_v4 }
  0x23   :  { %v35_v11 = vmul.f32 %v69_v8, %v26_v5 }
  0x24   :  { %v30_v12 = vsel %vm29_vm0, %v25_v4, %v28_v9 }
  0x25   :  { %v33_v13 = vsel %vm31_vm1, %v32_v7, %v30_v12  ;;  %v37_v14 = vsel %vm36_vm2, %v26_v5, %v35_v11 }
  0x26   :  { %v43_v15 = vsub.f32 0.0, %v33_v13  ;;  %v40_v16 = vsel %vm38_vm3, %v39_v10, %v37_v14 }
  0x27   :  { %v44_v17 = vsub.f32 0.0, %v40_v16 }
  0x28   :  { %v45_v18 = vsel %vm41_vm4, %v43_v15, %v33_v13 }
  0x29   :  { %47 = vst [vmem:[#allocation5] sm:$0xff] %v45_v18  ;;  %v46_v19 = vsel %vm42_vm5, %v44_v17, %v40_v16 }
  0x2a   :  { %48 = vst [vmem:[#allocation5 + $0x8] sm:$0xff] %v46_v19 }
  0x2b   :  { %103 = shalt.err (!%p100_p12)
}
  0x2c   :  { %s104_s22 = scalar_lea.hbm %s155_s1, 256 }
  0x2d   :  { %p105_p13 = scmp.ne.s32.totalorder %s155_s1, %s104_s22  ;;  %p108_p0 = scmp.lt.u32.totalorder %s104_s22, %s155_s1 }
  0x2f   :  { %p110_p1 = pnand %p108_p0, %p105_p13 }
  0x31   :  { %113 = shalt.err (!%p110_p1)
}
  0x32   :  { %58 = dma.vmem_to_hbm [thread:$0]  %s56_s18, 256, %s155_s1, [#allocation4]  }
  0x33   :  { %116 = dma.done.wait [#allocation4], 256  }
  0x34   :  { %117 = vsyncadd [#allocation4], 4294967040 }
  0x35   :  { %62 = vsyncpa [#allocation3], 1 }
  0x36   :  { %63 = vsyncpa [#allocation4], 1 }

</bundles_post_ra>
